<compile_context>
chip_gen: v7x
topology: tpu7x:2x2x1
jax: 0.10.0
libtpu: 0.0.40
codegen_flags: <defaults>
</compile_context>

<pallas_src>
import functools

import jax
import jax.numpy as jnp
from jax import lax
from jax.experimental import pallas as pl
from jax.experimental.pallas import tpu as pltpu

_LANE = 128
_SUB = 8
_W4, _W3, _W2, _W1 = 0.4, 0.3, 0.2, 0.1


def _round_up(x, m):
    return ((x + m - 1) // m) * m


def _weighted_bce(x4, x3, x2, x1, y):
    """Elementwise numerically-stable BCE-with-logits, pre-weighted 0.4/0.3/0.2/0.1.

    `y` must already be float32; logits may be f32 or bf16 (upcast here so bf16
    inputs coming straight from a bf16 producer need no wrapper-side cast)."""
    def bce(x):
        x = x.astype(jnp.float32)
        # PyTorch's stable formulation: max(x,0) - x*y + log1p(exp(-|x|))
        return jnp.maximum(x, 0.0) - x * y + jnp.log1p(jnp.exp(-jnp.abs(x)))
    return _W4 * bce(x4) + _W3 * bce(x3) + _W2 * bce(x2) + _W1 * bce(x1)


def _single_block_kernel(dp4_ref, dp3_ref, dp2_ref, dp1_ref, lbl_ref, out_ref):
    """Tiny-input path: whole problem resident in VMEM, one straight-line block."""
    y = lbl_ref[...].astype(jnp.float32)
    term = _weighted_bce(dp4_ref[...], dp3_ref[...], dp2_ref[...], dp1_ref[...], y)
    out_ref[...] = jnp.zeros((1, 1), jnp.float32) + jnp.sum(term)


def _tiled_kernel(dp4_ref, dp3_ref, dp2_ref, dp1_ref, lbl_ref, out_ref, *,
                  rows, tr, steps):
    """Streaming sum-reduction into a resident (1, 8, 128) accumulator block.

    grid = (cores, steps); axis 0 is "parallel" (v7x 2-TC split), axis 1 "arbitrary".
    The (tr,128) tile is consumed in (8,128) vreg chunks inside a fori_loop, so no
    (tr,128) temp is materialized in VMEM; rows past the logical end (partial last
    block / clamped redundant block) are masked to contribute exactly 0.
    """
    c = pl.program_id(0)
    i = pl.program_id(1)

    @pl.when(i == 0)
    def _():
        out_ref[...] = jnp.zeros_like(out_ref)

    # UNclamped global row offset of this step (the index_map clamps the DMA
    # address; this mask is what guarantees correctness for redundant steps).
    row0 = (c * steps + i) * tr
    rows_left = rows - row0                     # may be <= 0 for redundant steps
    sub_iota = lax.broadcasted_iota(jnp.int32, (_SUB, _LANE), 0)

    num_chunks = tr // _SUB

    def body(k, acc):
        off = pl.multiple_of(k * _SUB, _SUB)
        sl = pl.ds(off, _SUB)
        y = lbl_ref[sl, :].astype(jnp.float32)
        term = _weighted_bce(dp4_ref[sl, :], dp3_ref[sl, :], dp2_ref[sl, :],
                             dp1_ref[sl, :], y)
        valid = (sub_iota + k * _SUB) < rows_left
        return acc + jnp.where(valid, term, 0.0)

    acc = lax.fori_loop(0, num_chunks, body,
                        jnp.zeros((_SUB, _LANE), jnp.float32),
                        unroll=min(4, num_chunks))
    out_ref[...] += acc[None]


def multi_bce_loss(dp4, dp3, dp2, dp1, label, *,
                   max_single_rows=512, max_tile_rows=2048):
    """Weighted mean BCE-with-logits. max_tile_rows=2048 keeps the double-buffered
    input working set ~10 MiB (safe on v7x's 64 MiB VMEM); 4096 is fine on v5e/v6e."""
    assert dp4.shape == dp3.shape == dp2.shape == dp1.shape == label.shape
    n = dp4.size
    rows = n // _LANE
    r = n - rows * _LANE            # sub-lane tail, < 128 elements

    flats = [x.reshape(-1) for x in (dp4, dp3, dp2, dp1, label)]

    # --- tail (< 128 elements): one-liner JAX epilogue, reads only `r` elems ---
    tail_sum = jnp.float32(0.0)
    if r:
        t4, t3, t2, t1, ty = (f[n - r:] for f in flats)
        tail_sum = jnp.sum(_weighted_bce(t4, t3, t2, t1, ty.astype(jnp.float32)))

    if rows == 0:
        return tail_sum * (1.0 / n)

    # --- bulk: (rows, 128) lane-dense view ---
    if r:
        # n % 128 != 0: this slice materializes one bulk copy (unavoidable without
        # manual 1-D DMA); the common n % 128 == 0 case below is fully copy-free.
        bulk = [f[: n - r].reshape(rows, _LANE) for f in flats]
    else:
        bulk = [f.reshape(rows, _LANE) for f in flats]   # free bitcast reshapes

    if rows <= max_single_rows:
        # Truly tiny inputs only (<= 0.25 MiB per operand): one un-pipelined block.
        s = pl.pallas_call(
            _single_block_kernel,
            out_shape=jax.ShapeDtypeStruct((1, 1), jnp.float32),
            in_specs=[pl.BlockSpec(memory_space=pltpu.MemorySpace.VMEM)] * 5,
            out_specs=pl.BlockSpec(memory_space=pltpu.MemorySpace.VMEM),
        )(*bulk)
        total = s[0, 0]
    else:
        cores = 2        # v7x: one half per TensorCore; harmless no-op on 1-TC chips
        # Big fixed tiles (no divisor search). tr is a multiple of 32 (when the cap
        # allows) so the in-kernel 8-row chunk loop unrolls evenly.
        tr = min(max_tile_rows, _round_up(pl.cdiv(rows, cores), 32))
        blocks_total = pl.cdiv(rows, tr)
        steps = pl.cdiv(blocks_total, cores)
        last_block = blocks_total - 1

        # Clamp keeps every DMA in-bounds; redundant (clamped) steps and the partial
        # last block contribute exactly 0 via the in-kernel row mask.
        in_spec = pl.BlockSpec(
            (tr, _LANE), lambda c, i: (jnp.minimum(c * steps + i, last_block), 0))
        out_spec = pl.BlockSpec((1, _SUB, _LANE), lambda c, i: (c, 0, 0))

        # NOTE: on v7x this kernel may flip from HBM-bound to EUP-bound (~8 EUP
        # transcendentals per vreg); only transcendental-count reduction helps there.
        partials = pl.pallas_call(
            functools.partial(_tiled_kernel, rows=rows, tr=tr, steps=steps),
            out_shape=jax.ShapeDtypeStruct((cores, _SUB, _LANE), jnp.float32),
            grid_spec=pltpu.PrefetchScalarGridSpec(
                num_scalar_prefetch=0,
                grid=(cores, steps),
                in_specs=[in_spec] * 5,
                out_specs=out_spec),
            compiler_params=pltpu.CompilerParams(
                dimension_semantics=("parallel", "arbitrary")),
        )(*bulk)
        total = jnp.sum(partials)

    # All four losses share N, so weighted-sum-of-means == weighted-sum-of-sums / N.
    return (total + tail_sum) * (1.0 / n)


def _ref_loss(dp4, dp3, dp2, dp1, label):
    def bce_mean(x, y):
        x = x.astype(jnp.float32)
        y = y.astype(jnp.float32)
        return jnp.mean(jnp.maximum(x, 0.0) - x * y + jnp.log1p(jnp.exp(-jnp.abs(x))))
    return (0.4 * bce_mean(dp4, label) + 0.3 * bce_mean(dp3, label)
            + 0.2 * bce_mean(dp2, label) + 0.1 * bce_mean(dp1, label))


if __name__ == "__main__":
    key = jax.random.PRNGKey(0)

    def make(shape, k):
        k4, k3, k2, k1, kl = jax.random.split(k, 5)
        mk = lambda kk: jax.random.normal(kk, shape, dtype=jnp.float32)
        lbl = (jax.random.uniform(kl, shape) > 0.5).astype(jnp.float32)
        return mk(k4), mk(k3), mk(k2), mk(k1), lbl

    # 1) small NCHW input (n = 2048, multiple of 128, zero-copy) -> single-block path
    a = make((2, 4, 16, 16), jax.random.fold_in(key, 0))
    loss = jax.block_until_ready(multi_bce_loss(*a))
    ref = _ref_loss(*a)
    assert jnp.allclose(loss, ref, atol=1e-5, rtol=1e-5), (loss, ref)

    # 2) n = 3456 -> rows = 27: forced tiled path exercises the 2-core grid,
    #    partial-block masking and the clamped redundant block.
    b = make((2, 3, 24, 24), jax.random.fold_in(key, 1))
    loss_t = jax.block_until_ready(multi_bce_loss(*b, max_single_rows=0))
    ref_t = _ref_loss(*b)
    assert jnp.allclose(loss_t, ref_t, atol=1e-5, rtol=1e-5), (loss_t, ref_t)

    # 3) n = 2584 (not a multiple of 128): multi-step tiled accumulation (small
    #    forced tiles) + the tiny JAX tail epilogue.
    c = make((2, 4, 17, 19), jax.random.fold_in(key, 2))
    loss_m = jax.block_until_ready(
        multi_bce_loss(*c, max_single_rows=0, max_tile_rows=8))
    ref_m = _ref_loss(*c)
    assert jnp.allclose(loss_m, ref_m, atol=1e-5, rtol=1e-5), (loss_m, ref_m)

    print("KERNEL_OK")
</pallas_src>

<mosaic_0001>
module attributes {stable_mosaic.version = 11 : i64} {
  func.func @_single_block_kernel(%arg0: memref<16x128xf32, #tpu.memory_space<vmem>>, %arg1: memref<16x128xf32, #tpu.memory_space<vmem>>, %arg2: memref<16x128xf32, #tpu.memory_space<vmem>>, %arg3: memref<16x128xf32, #tpu.memory_space<vmem>>, %arg4: memref<16x128xf32, #tpu.memory_space<vmem>>, %arg5: memref<1x1xf32, #tpu.memory_space<vmem>>) attributes {dimension_semantics = [], scalar_prefetch = 0 : i64, scratch_operands = 0 : i64, tpu.core_type = #tpu.core_type<tc>} {
    %c0 = arith.constant 0 : index
    %c0_0 = arith.constant 0 : index
    %0 = vector.load %arg4[%c0, %c0_0] : memref<16x128xf32, #tpu.memory_space<vmem>>, vector<16x128xf32>
    %c0_1 = arith.constant 0 : index
    %c0_2 = arith.constant 0 : index
    %1 = vector.load %arg0[%c0_1, %c0_2] : memref<16x128xf32, #tpu.memory_space<vmem>>, vector<16x128xf32>
    %c0_3 = arith.constant 0 : index
    %c0_4 = arith.constant 0 : index
    %2 = vector.load %arg1[%c0_3, %c0_4] : memref<16x128xf32, #tpu.memory_space<vmem>>, vector<16x128xf32>
    %c0_5 = arith.constant 0 : index
    %c0_6 = arith.constant 0 : index
    %3 = vector.load %arg2[%c0_5, %c0_6] : memref<16x128xf32, #tpu.memory_space<vmem>>, vector<16x128xf32>
    %c0_7 = arith.constant 0 : index
    %c0_8 = arith.constant 0 : index
    %4 = vector.load %arg3[%c0_7, %c0_8] : memref<16x128xf32, #tpu.memory_space<vmem>>, vector<16x128xf32>
    %cst = arith.constant 0.000000e+00 : f32
    %5 = vector.broadcast %cst : f32 to vector<16x128xf32>
    %6 = arith.maximumf %1, %5 : vector<16x128xf32>
    %7 = arith.mulf %1, %0 : vector<16x128xf32>
    %8 = arith.subf %6, %7 : vector<16x128xf32>
    %9 = math.absf %1 : vector<16x128xf32>
    %cst_9 = arith.constant 0.000000e+00 : f32
    %10 = vector.broadcast %cst_9 : f32 to vector<16x128xf32>
    %11 = arith.subf %10, %9 : vector<16x128xf32>
    %12 = math.exp %11 : vector<16x128xf32>
    %13 = math.log1p %12 : vector<16x128xf32>
    %14 = arith.addf %8, %13 : vector<16x128xf32>
    %cst_10 = arith.constant 4.000000e-01 : f32
    %15 = vector.broadcast %cst_10 : f32 to vector<16x128xf32>
    %16 = arith.mulf %15, %14 : vector<16x128xf32>
    %cst_11 = arith.constant 0.000000e+00 : f32
    %17 = vector.broadcast %cst_11 : f32 to vector<16x128xf32>
    %18 = arith.maximumf %2, %17 : vector<16x128xf32>
    %19 = arith.mulf %2, %0 : vector<16x128xf32>
    %20 = arith.subf %18, %19 : vector<16x128xf32>
    %21 = math.absf %2 : vector<16x128xf32>
    %cst_12 = arith.constant 0.000000e+00 : f32
    %22 = vector.broadcast %cst_12 : f32 to vector<16x128xf32>
    %23 = arith.subf %22, %21 : vector<16x128xf32>
    %24 = math.exp %23 : vector<16x128xf32>
    %25 = math.log1p %24 : vector<16x128xf32>
    %26 = arith.addf %20, %25 : vector<16x128xf32>
    %cst_13 = arith.constant 3.000000e-01 : f32
    %27 = vector.broadcast %cst_13 : f32 to vector<16x128xf32>
    %28 = arith.mulf %27, %26 : vector<16x128xf32>
    %29 = arith.addf %16, %28 : vector<16x128xf32>
    %cst_14 = arith.constant 0.000000e+00 : f32
    %30 = vector.broadcast %cst_14 : f32 to vector<16x128xf32>
    %31 = arith.maximumf %3, %30 : vector<16x128xf32>
    %32 = arith.mulf %3, %0 : vector<16x128xf32>
    %33 = arith.subf %31, %32 : vector<16x128xf32>
    %34 = math.absf %3 : vector<16x128xf32>
    %cst_15 = arith.constant 0.000000e+00 : f32
    %35 = vector.broadcast %cst_15 : f32 to vector<16x128xf32>
    %36 = arith.subf %35, %34 : vector<16x128xf32>
    %37 = math.exp %36 : vector<16x128xf32>
    %38 = math.log1p %37 : vector<16x128xf32>
    %39 = arith.addf %33, %38 : vector<16x128xf32>
    %cst_16 = arith.constant 2.000000e-01 : f32
    %40 = vector.broadcast %cst_16 : f32 to vector<16x128xf32>
    %41 = arith.mulf %40, %39 : vector<16x128xf32>
    %42 = arith.addf %29, %41 : vector<16x128xf32>
    %cst_17 = arith.constant 0.000000e+00 : f32
    %43 = vector.broadcast %cst_17 : f32 to vector<16x128xf32>
    %44 = arith.maximumf %4, %43 : vector<16x128xf32>
    %45 = arith.mulf %4, %0 : vector<16x128xf32>
    %46 = arith.subf %44, %45 : vector<16x128xf32>
    %47 = math.absf %4 : vector<16x128xf32>
    %cst_18 = arith.constant 0.000000e+00 : f32
    %48 = vector.broadcast %cst_18 : f32 to vector<16x128xf32>
    %49 = arith.subf %48, %47 : vector<16x128xf32>
    %50 = math.exp %49 : vector<16x128xf32>
    %51 = math.log1p %50 : vector<16x128xf32>
    %52 = arith.addf %46, %51 : vector<16x128xf32>
    %cst_19 = arith.constant 1.000000e-01 : f32
    %53 = vector.broadcast %cst_19 : f32 to vector<16x128xf32>
    %54 = arith.mulf %53, %52 : vector<16x128xf32>
    %55 = arith.addf %42, %54 : vector<16x128xf32>
    %cst_20 = arith.constant 0.000000e+00 : f32
    %56 = vector.broadcast %cst_20 : f32 to vector<1x1xf32>
    %57 = vector.shape_cast %55 : vector<16x128xf32> to vector<1x16x128xf32>
    %cst_21 = arith.constant dense<0.000000e+00> : vector<1xf32>
    %58 = vector.multi_reduction <add>, %57, %cst_21 [1, 2] : vector<1x16x128xf32> to vector<1xf32>
    %59 = vector.shape_cast %58 : vector<1xf32> to vector<1x1x1xf32>
    %60 = vector.extract %59[0, 0, 0] : f32 from vector<1x1x1xf32>
    %61 = vector.broadcast %60 : f32 to vector<1x1xf32>
    %62 = arith.addf %56, %61 : vector<1x1xf32>
    %c0_22 = arith.constant 0 : index
    %c0_23 = arith.constant 0 : index
    %63 = vector.load %arg5[%c0_22, %c0_23] : memref<1x1xf32, #tpu.memory_space<vmem>>, vector<1x1xf32>
    tpu.vector_store %arg5[%c0_22, %c0_23], %62 {strides = array<i32>} : memref<1x1xf32, #tpu.memory_space<vmem>>, vector<1x1xf32>,
    return
  }
}

</mosaic_0001>

<bundles_post_ra>
// kernel: tpu_custom_call.1
= control target key start
LH: loop header
LB: loop body
LE: loop exit
PB: predicated region body
PF: predicated region fallthrough
CT: control target
= control target key end

     0   :  { %10 = vsyncpa [#allocation3], 0  ;;  %s704_s0 = inlined_call_operand.hbm [shape: f32[16,128], index: 0, kind: input, shape index: {}]   ;;  %s705_s1 = inlined_call_operand.hbm [shape: f32[16,128], index: 1, kind: input, shape index: {}]   ;;  %s706_s2 = inlined_call_operand.hbm [shape: f32[16,128], index: 2, kind: input, shape index: {}]   ;;  %s707_s3 = inlined_call_operand.hbm [shape: f32[16,128], index: 3, kind: input, shape index: {}]   ;;  %s708_s4 = inlined_call_operand.hbm [shape: f32[16,128], index: 4, kind: input, shape index: {}]   ;;  %s709_s5 = inlined_call_operand.hbm [shape: f32[1,1], index: 5, kind: output, shape index: {}]  }
   0x1   :  { %11 = vsyncpa [#allocation6], 0 }
   0x2   :  { %12 = vsyncpa [#allocation9], 0 }
   0x3   :  { %13 = vsyncpa [#allocation4], 0  ;;  %s462_s18 = smov [#allocation5]   ;;  %s463_s20 = smov [#allocation8]  }
   0x4   :  { %s31_s19 = sshll.u32 %s462_s18, 4  ;;  %s55_s21 = sshll.u32 %s463_s20, 4  ;;  %s32_s19 = int_to_ptr.vmem [resolvable:$true] %s31_s19  ;;  %s500_s21 = int_to_ptr.vmem [resolvable:$true] %s55_s21 }
   0x5   :  { %s322_s24 = scalar_lea.hbm %s705_s1, 256 }
   0x6   :  { %p323_p0 = scmp.ne.s32.totalorder %s705_s1, %s322_s24  ;;  %p326_p1 = scmp.lt.u32.totalorder %s322_s24, %s705_s1 }
   0x8   :  { %p328_p2 = pnand %p326_p1, %p323_p0 }
   0xa   :  { %331 = shalt.err (!%p328_p2)
}
   0xb   :  { %s332_s29 = scalar_lea.vmem %s32_s19, 256  ;;  %p337_p4 = scmp.lt.s32.totalorder %s32_s19, %s32_s19 }
   0xc   :  { %p333_p3 = scmp.ne.s32.totalorder %s32_s19, %s332_s29  ;;  %p338_p5 = scmp.lt.s32.totalorder %s332_s29, %s332_s29 }
   0xe   :  { %p339_p6 = por %p338_p5, %p337_p4 }
  0x10   :  { %p340_p7 = pnand %p339_p6, %p333_p3 }
  0x12   :  { %343 = shalt.err (!%p340_p7)
}
  0x13   :  { %s464_s30 = smov 128   ;;  %s465_s6 = smov 8  }
  0x14   :  { %37 = dma.hbm_to_vmem [thread:$0]  %s705_s1, 256, %s32_s19, [#allocation6], %s464_s30, %s464_s30, %s465_s6  }
  0x15   :  { %s344_s11 = scalar_lea.hbm %s707_s3, 256 }
  0x16   :  { %p345_p8 = scmp.ne.s32.totalorder %s707_s3, %s344_s11  ;;  %p348_p9 = scmp.lt.u32.totalorder %s344_s11, %s707_s3 }
  0x18   :  { %p350_p10 = pnand %p348_p9, %p345_p8 }
  0x1a   :  { %353 = shalt.err (!%p350_p10)
}
  0x1b   :  { %s354_s16 = scalar_lea.vmem %s500_s21, 256  ;;  %p359_p12 = scmp.lt.s32.totalorder %s500_s21, %s500_s21 }
  0x1c   :  { %p355_p11 = scmp.ne.s32.totalorder %s500_s21, %s354_s16  ;;  %p360_p13 = scmp.lt.s32.totalorder %s354_s16, %s354_s16 }
  0x1e   :  { %p361_p0 = por %p360_p13, %p359_p12 }
  0x20   :  { %p362_p1 = pnand %p361_p0, %p355_p11 }
  0x22   :  { %365 = shalt.err (!%p362_p1)
}
  0x23   :  { %61 = dma.hbm_to_vmem [thread:$0]  %s707_s3, 256, %s500_s21, [#allocation9], %s464_s30, %s464_s30, %s465_s6  }
  0x24   :  { %s466_s18 = smov [#allocation2]   ;;  %s467_s20 = smov [#allocation7]  }
  0x25   :  { %s19_s19 = sshll.u32 %s466_s18, 4  ;;  %s43_s22 = sshll.u32 %s467_s20, 4  ;;  %s20_s19 = int_to_ptr.vmem [resolvable:$true] %s19_s19  ;;  %s537_s22 = int_to_ptr.vmem [resolvable:$true] %s43_s22 }
  0x26   :  { %s366_s25 = scalar_lea.hbm %s704_s0, 256 }
  0x27   :  { %p367_p2 = scmp.ne.s32.totalorder %s704_s0, %s366_s25  ;;  %p370_p3 = scmp.lt.u32.totalorder %s366_s25, %s704_s0 }
  0x29   :  { %p372_p4 = pnand %p370_p3, %p367_p2 }
  0x2b   :  { %375 = shalt.err (!%p372_p4)
}
  0x2c   :  { %s376_s3 = scalar_lea.vmem %s20_s19, 256  ;;  %p381_p6 = scmp.lt.s32.totalorder %s20_s19, %s20_s19 }
  0x2d   :  { %p377_p5 = scmp.ne.s32.totalorder %s20_s19, %s376_s3  ;;  %p382_p7 = scmp.lt.s32.totalorder %s376_s3, %s376_s3 }
  0x2f   :  { %p383_p8 = por %p382_p7, %p381_p6 }
  0x31   :  { %p384_p9 = pnand %p383_p8, %p377_p5 }
  0x33   :  { %387 = shalt.err (!%p384_p9)
}
  0x34   :  { %25 = dma.hbm_to_vmem [thread:$0]  %s704_s0, 256, %s20_s19, [#allocation3], %s464_s30, %s464_s30, %s465_s6  }
  0x35   :  { %s388_s10 = scalar_lea.hbm %s706_s2, 256 }
  0x36   :  { %p389_p10 = scmp.ne.s32.totalorder %s706_s2, %s388_s10  ;;  %p392_p11 = scmp.lt.u32.totalorder %s388_s10, %s706_s2 }
  0x38   :  { %p394_p12 = pnand %p392_p11, %p389_p10 }
  0x3a   :  { %397 = shalt.err (!%p394_p12)
}
  0x3b   :  { %s398_s15 = scalar_lea.vmem %s537_s22, 256  ;;  %p403_p0 = scmp.lt.s32.totalorder %s537_s22, %s537_s22 }
  0x3c   :  { %p399_p13 = scmp.ne.s32.totalorder %s537_s22, %s398_s15  ;;  %p404_p1 = scmp.lt.s32.totalorder %s398_s15, %s398_s15 }
  0x3e   :  { %p405_p2 = por %p404_p1, %p403_p0 }
  0x40   :  { %p406_p3 = pnand %p405_p2, %p399_p13 }
  0x42   :  { %409 = shalt.err (!%p406_p3)
}
  0x43   :  { %49 = dma.hbm_to_vmem [thread:$0]  %s706_s2, 256, %s537_s22, [#allocation6], %s464_s30, %s464_s30, %s465_s6  }
  0x44   :  { %s468_s1 = smov [#allocation10]   ;;  %s410_s20 = scalar_lea.hbm %s708_s4, 256 }
  0x45   :  { %s67_s17 = sshll.u32 %s468_s1, 4  ;;  %p411_p4 = scmp.ne.s32.totalorder %s708_s4, %s410_s20  ;;  %s68_s17 = int_to_ptr.vmem [resolvable:$true] %s67_s17 }
  0x46   :  { %p414_p5 = scmp.lt.u32.totalorder %s410_s20, %s708_s4 }
  0x48   :  { %p416_p6 = pnand %p414_p5, %p411_p4 }
  0x4a   :  { %419 = shalt.err (!%p416_p6)
}
  0x4b   :  { %s420_s27 = scalar_lea.vmem %s68_s17, 256  ;;  %p425_p8 = scmp.lt.s32.totalorder %s68_s17, %s68_s17 }
  0x4c   :  { %p421_p7 = scmp.ne.s32.totalorder %s68_s17, %s420_s27  ;;  %p426_p9 = scmp.lt.s32.totalorder %s420_s27, %s420_s27 }
  0x4e   :  { %p427_p10 = por %p426_p9, %p425_p8 }
  0x50   :  { %p428_p11 = pnand %p427_p10, %p421_p7 }
  0x52   :  { %431 = shalt.err (!%p428_p11)
}
  0x53   :  { %73 = dma.hbm_to_vmem [thread:$0]  %s708_s4, 256, %s68_s17, [#allocation9], %s464_s30, %s464_s30, %s465_s6  }
  0x54   :  { %454 = dma.done.wait [#allocation3], 256  }
  0x55   :  { %455 = vsyncadd [#allocation3], 4294967040 }
  0x56   :  { %456 = dma.done.wait [#allocation6], 512  }
  0x57   :  { %457 = vsyncadd [#allocation6], 4294966784 }
  0x58   :  { %458 = dma.done.wait [#allocation9], 512  }
  0x59   :  { %459 = vsyncadd [#allocation9], 4294966784  ;;  %v91_v0 = vld [vmem:[#allocation2] sm:$0xff]  ;;  %v589_v1 = vld [vmem:[#allocation2 + $0x8] sm:$0xff]  ;;  %s469_s4 = smov [#allocation11]   ;;  %vm261_vm8 = vcmask 0  }
  0x5a   :  { %v591_v2 = vld [vmem:[#allocation5] sm:$0xff]  ;;  %v105_v3 = vand.u32 2147483647, %v91_v0  ;;  %v593_v4 = vld [vmem:[#allocation5 + $0x8] sm:$0xff]  ;;  %v106_v5 = vand.u32 2147483647, %v589_v1 }
  0x5b   :  { %v141_v8 = vand.u32 2147483647, %v591_v2  ;;  %v95_v9 = vld [vmem:[#allocation7] sm:$0xff]  ;;  %v597_v10 = vld [vmem:[#allocation7 + $0x8] sm:$0xff]  ;;  %v142_v12 = vand.u32 2147483647, %v593_v4 }
  0x5c   :  { %v107_v6 = vsub.f32 0.0, %v105_v3  ;;  %v108_v7 = vsub.f32 0.0, %v106_v5  ;;  %v600_v15 = vld [vmem:[#allocation8] sm:$0xff]  ;;  %v179_v18 = vand.u32 2147483647, %v95_v9  ;;  %v603_v20 = vld [vmem:[#allocation8 + $0x8] sm:$0xff] }
  0x5d   :  { %v143_v14 = vsub.f32 0.0, %v141_v8  ;;  %v144_v16 = vsub.f32 0.0, %v142_v12  ;;  %v180_v19 = vand.u32 2147483647, %v597_v10  ;;  %v89_v24 = vld [vmem:[#allocation10] sm:$0xff]  ;;  %v90_v29 = vld [vmem:[#allocation10 + $0x8] sm:$0xff] }
  0x5e   :  { %v109_v11 = vmul.f32 1.442695, %v107_v6  ;;  %v111_v13 = vmul.f32 1.442695, %v108_v7  ;;  %v181_v22 = vsub.f32 0.0, %v179_v18  ;;  %v99_v32 = vmax.f32 %v91_v0, 0.0 }
  0x5f   :  { %v145_v17 = vmul.f32 1.442695, %v143_v14  ;;  %v147_v21 = vmul.f32 1.442695, %v144_v16  ;;  %v182_v23 = vsub.f32 0.0, %v180_v19  ;;  %v101_v33 = vmul.f32 %v91_v0, %v89_v24  ;;  %s269_s30 = sshll.u32 %s469_s4, 4  ;;  %s270_s30 = int_to_ptr.vmem [resolvable:$true] %s269_s30 }
  0x60   :  { %290 = vpow2.f32 %v109_v11  ;;  %v217_v25 = vand.u32 2147483647, %v600_v15  ;;  %v183_v26 = vmul.f32 1.442695, %v181_v22  ;;  %v218_v28 = vand.u32 2147483647, %v603_v20  ;;  %p437_p13 = scmp.lt.s32.totalorder %s270_s30, %s270_s30 }
  0x61   :  { %292 = vpow2.f32 %v111_v13  ;;  %v185_v27 = vmul.f32 1.442695, %v182_v23  ;;  %v100_v35 = vmax.f32 %v589_v1, 0.0  ;;  %v102_v36 = vmul.f32 %v589_v1, %v90_v29  ;;  %s432_s28 = scalar_lea.vmem %s270_s30, 16  ;;  %s436_s29 = scalar_lea.vmem %s270_s30, 32 }
  0x62   :  { %294 = vpow2.f32 %v145_v17  ;;  %v219_v30 = vsub.f32 0.0, %v217_v25  ;;  %v220_v31 = vsub.f32 0.0, %v218_v28  ;;  %v137_v37 = vmul.f32 %v591_v2, %v89_v24  ;;  %p433_p12 = scmp.ne.s32.totalorder %s270_s30, %s432_s28  ;;  %p438_p0 = scmp.lt.s32.totalorder %s436_s29, %s432_s28 }
  0x63   :  { %296 = vpow2.f32 %v147_v21  ;;  %v135_v40 = vmax.f32 %v591_v2, 0.0  ;;  %v136_v41 = vmax.f32 %v593_v4, 0.0  ;;  %v138_v42 = vmul.f32 %v593_v4, %v90_v29 }
  0x64   :  { %298 = vpow2.f32 %v183_v26  ;;  %v221_v34 = vmul.f32 1.442695, %v219_v30  ;;  %v223_v38 = vmul.f32 1.442695, %v220_v31  ;;  %v173_v45 = vmax.f32 %v95_v9, 0.0  ;;  %p439_p1 = por %p438_p0, %p437_p13 }
  0x65   :  { %300 = vpow2.f32 %v185_v27  ;;  %v175_v46 = vmul.f32 %v95_v9, %v89_v24  ;;  %v174_v48 = vmax.f32 %v597_v10, 0.0  ;;  %v176_v49 = vmul.f32 %v597_v10, %v90_v29 }
  0x66   :  { %302 = vpow2.f32 %v221_v34  ;;  %v615_v51 = vsub.f32 %v99_v32, %v101_v33  ;;  %v617_v54 = vsub.f32 %v100_v35, %v102_v36  ;;  %v619_v57 = vsub.f32 %v135_v40, %v137_v37  ;;  %p440_p2 = pnand %p439_p1, %p433_p12 }
  0x67   :  { %304 = vpow2.f32 %v223_v38  ;;  %v621_v58 = vsub.f32 %v136_v41, %v138_v42  ;;  %v623_v60 = vsub.f32 %v173_v45, %v175_v46  ;;  %v625_v63 = vsub.f32 %v174_v48, %v176_v49 }
  0x68   :  { %v211_v3 = vmax.f32 %v600_v15, 0.0  ;;  %v212_v8 = vmax.f32 %v603_v20, 0.0  ;;  %v213_v11 = vmul.f32 %v600_v15, %v89_v24  ;;  %v631_v12 = vmul.f32 %v603_v20, %v90_v29 }
  0x6a   :  { %v291_v39 = vpop.eup %290 }
  0x6b   :  { %v293_v43 = vpop.eup %292  ;;  %v113_v44 = vadd.f32 1.0, %v291_v39  ;;  %v116_v52 = vmul.f32 -0.5, %v291_v39  ;;  %v119_v61 = vand.u32 2147483647, %v291_v39 }
  0x6c   :  { %v122_v47 = vadd.f32 1.0, %v293_v43  ;;  %v295_v50 = vpop.eup %294  ;;  %v125_v55 = vmul.f32 -0.5, %v293_v43  ;;  %v128_v2 = vand.u32 2147483647, %v293_v43 }
  0x6d   :  { %306 = vlog2.f32 %v113_v44  ;;  %v297_v53 = vpop.eup %296  ;;  %v149_v56 = vadd.f32 1.0, %v295_v50  ;;  %v152_v62 = vmul.f32 -0.5, %v295_v50  ;;  %v117_v1 = vadd.f32 1.0, %v116_v52 }
  0x6e   :  { %308 = vlog2.f32 %v122_v47  ;;  %v158_v59 = vadd.f32 1.0, %v297_v53  ;;  %v299_v0 = vpop.eup %298  ;;  %v126_v5 = vadd.f32 1.0, %v125_v55  ;;  %v161_v6 = vmul.f32 -0.5, %v297_v53 }
  0x6f   :  { %310 = vlog2.f32 %v149_v56  ;;  %v301_v4 = vpop.eup %300  ;;  %v187_v7 = vadd.f32 1.0, %v299_v0  ;;  %v155_v9 = vand.u32 2147483647, %v295_v50  ;;  %vm635_vm0 = vcmp.lt.f32.partialorder %v119_v61, 0.0004427343 }
  0x70   :  { %312 = vlog2.f32 %v158_v59  ;;  %v196_v10 = vadd.f32 1.0, %v301_v4  ;;  %v633_v13 = vpop.eup %302  ;;  %v153_v16 = vadd.f32 1.0, %v152_v62  ;;  %v190_v17 = vmul.f32 -0.5, %v299_v0 }
  0x71   :  { %314 = vlog2.f32 %v187_v7  ;;  %v639_v18 = vpop.eup %304  ;;  %v118_v19 = vmul.f32 %v291_v39, %v117_v1  ;;  %vm641_vm1 = vcmp.lt.f32.partialorder %v128_v2, 0.0004427343  ;;  %v225_v22 = vadd.f32 1.0, %v633_v13 }
  0x72   :  { %316 = vlog2.f32 %v196_v10  ;;  %v127_v23 = vmul.f32 %v293_v43, %v126_v5  ;;  %v162_v24 = vadd.f32 1.0, %v161_v6  ;;  %v164_v25 = vand.u32 2147483647, %v297_v53 }
  0x73   :  { %v199_v26 = vmul.f32 -0.5, %v301_v4  ;;  %vm646_vm2 = vcmp.lt.f32.partialorder %v155_v9, 0.0004427343  ;;  %v193_v29 = vand.u32 2147483647, %v299_v0  ;;  %318 = vlog2.f32 %v225_v22 }
  0x74   :  { %v234_v30 = vadd.f32 1.0, %v639_v18  ;;  %v154_v33 = vmul.f32 %v295_v50, %v153_v16  ;;  %v191_v34 = vadd.f32 1.0, %v190_v17  ;;  %v228_v35 = vmul.f32 -0.5, %v633_v13 }
  0x75   :  { %v202_v37 = vand.u32 2147483647, %v301_v4  ;;  %v237_v38 = vmul.f32 -0.5, %v639_v18  ;;  %v163_v41 = vmul.f32 %v297_v53, %v162_v24  ;;  %vm655_vm3 = vcmp.lt.f32.partialorder %v164_v25, 0.0004427343 }
  0x76   :  { %320 = vlog2.f32 %v234_v30  ;;  %v200_v43 = vadd.f32 1.0, %v199_v26  ;;  %vm662_vm4 = vcmp.lt.f32.partialorder %v193_v29, 0.0004427343  ;;  %v192_v52 = vmul.f32 %v299_v0, %v191_v34 }
  0x77   :  { %v307_v27 = vpop.eup %306  ;;  %v229_v53 = vadd.f32 1.0, %v228_v35  ;;  %vm669_vm5 = vcmp.lt.f32.partialorder %v202_v37, 0.0004427343  ;;  %v231_v59 = vand.u32 2147483647, %v633_v13  ;;  %v215_v16 = vsub.f32 %v211_v3, %v213_v11 }
  0x78   :  { %v309_v31 = vpop.eup %308  ;;  %v115_v32 = vmul.f32 0.6931472, %v307_v27  ;;  %v201_v2 = vmul.f32 %v301_v4, %v200_v43  ;;  %v240_v9 = vand.u32 2147483647, %v639_v18  ;;  %v216_v11 = vsub.f32 %v212_v8, %v631_v12 }
  0x79   :  { %v124_v36 = vmul.f32 0.6931472, %v309_v31  ;;  %v311_v39 = vpop.eup %310  ;;  %v230_v17 = vmul.f32 %v633_v13, %v229_v53  ;;  %vm232_vm6 = vcmp.lt.f32.partialorder %v231_v59, 0.0004427343 }
  0x7a   :  { %v121_v40 = vsel %vm635_vm0, %v118_v19, %v115_v32  ;;  %v313_v44 = vpop.eup %312  ;;  %v151_v47 = vmul.f32 0.6931472, %v311_v39  ;;  %vm241_vm7 = vcmp.lt.f32.partialorder %v240_v9, 0.0004427343 }
  0x7b   :  { %v130_v45 = vsel %vm641_vm1, %v127_v23, %v124_v36  ;;  %v131_v46 = vadd.f32 %v121_v40, %v615_v51  ;;  %v160_v50 = vmul.f32 0.6931472, %v313_v44  ;;  %v238_v51 = vadd.f32 1.0, %v237_v38  ;;  %v315_v61 = vpop.eup %314 }
  0x7c   :  { %v132_v49 = vadd.f32 %v130_v45, %v617_v54  ;;  %v157_v55 = vsel %vm646_vm2, %v154_v33, %v151_v47  ;;  %v317_v0 = vpop.eup %316  ;;  %v189_v7 = vmul.f32 0.6931472, %v315_v61 }
  0x7d   :  { %v133_v62 = vmul.f32 0.4, %v131_v46  ;;  %v166_v1 = vsel %vm655_vm3, %v163_v41, %v160_v50  ;;  %v167_v54 = vadd.f32 %v157_v55, %v619_v57  ;;  %v198_v14 = vmul.f32 0.6931472, %v317_v0  ;;  %v319_v19 = vpop.eup %318 }
  0x7e   :  { %v134_v5 = vmul.f32 0.4, %v132_v49  ;;  %v168_v6 = vadd.f32 %v166_v1, %v621_v58  ;;  %v195_v57 = vsel %vm662_vm4, %v192_v52, %v189_v7  ;;  %v239_v4 = vmul.f32 %v639_v18, %v238_v51 }
  0x7f   :  { %v169_v10 = vmul.f32 0.3, %v167_v54  ;;  %v204_v58 = vsel %vm669_vm5, %v201_v2, %v198_v14  ;;  %v205_v23 = vadd.f32 %v195_v57, %v623_v60  ;;  %v227_v24 = vmul.f32 0.6931472, %v319_v19 }
  0x80   :  { %v170_v21 = vmul.f32 0.3, %v168_v6  ;;  %v321_v25 = vpop.eup %320  ;;  %v206_v3 = vadd.f32 %v204_v58, %v625_v63 }
  0x81   :  { %v171_v22 = vadd.f32 %v169_v10, %v133_v62  ;;  %v207_v13 = vmul.f32 0.2, %v205_v23  ;;  %v233_v26 = vsel %vm232_vm6, %v230_v17, %v227_v24  ;;  %v236_v27 = vmul.f32 0.6931472, %v321_v25 }
  0x82   :  { %v172_v15 = vadd.f32 %v170_v21, %v134_v5  ;;  %v208_v18 = vmul.f32 0.2, %v206_v3  ;;  %v243_v28 = vadd.f32 %v233_v26, %v215_v16 }
  0x83   :  { %v209_v29 = vadd.f32 %v207_v13, %v171_v22  ;;  %v242_v30 = vsel %vm241_vm7, %v239_v4, %v236_v27 }
  0x84   :  { %v210_v31 = vadd.f32 %v208_v18, %v172_v15  ;;  %v244_v32 = vadd.f32 %v242_v30, %v216_v11  ;;  %v245_v60 = vmul.f32 0.1, %v243_v28 }
  0x86   :  { %v246_v33 = vmul.f32 0.1, %v244_v32  ;;  %v247_v34 = vadd.f32 %v245_v60, %v209_v29 }
  0x88   :  { %v248_v35 = vadd.f32 %v246_v33, %v210_v31 }
  0x8a   :  { %v249_v36 = vadd.f32 %v248_v35, %v247_v34 }
  0x8c   :  { %250 = vadd.xlane.f32.xlu0 %v249_v36 }
 0x119   :  { %v251_v63 = vpop.xlane.xlu0 %250 }
 0x11a   :  { %v252_v37 = vrot.slane %v251_v63, 4 }
 0x11c   :  { %v253_v20 = vadd.f32 %v252_v37, %v251_v63 }
 0x11e   :  { %v254_v8 = vrot.slane %v253_v20, 2 }
 0x120   :  { %v255_v12 = vadd.f32 %v254_v8, %v253_v20 }
 0x122   :  { %v256_v38 = vrot.slane %v255_v12, 1 }
 0x124   :  { %v257_v39 = vadd.f32 %v256_v38, %v255_v12 }
 0x126   :  { %280 = vpush %v257_v39 }
 0x157   :  { %s281_s6 = spop %280 }
 0x158   :  { %v259_v40 = vstv %s281_s6 }
 0x159   :  { %262 = vst.msk [vmem:[#allocation11] sm:$0x1] %vm261_vm8, %v259_v40 }
 0x15a   :  { %443 = shalt.err (!%p440_p2)
}
 0x15b   :  { %s444_s7 = scalar_lea.hbm %s709_s5, 16 }
 0x15c   :  { %p445_p3 = scmp.ne.s32.totalorder %s709_s5, %s444_s7  ;;  %p448_p4 = scmp.lt.u32.totalorder %s444_s7, %s709_s5 }
 0x15e   :  { %p450_p5 = pnand %p448_p4, %p445_p3 }
 0x160   :  { %453 = shalt.err (!%p450_p5)
}
 0x161   :  { %272 = dma.vmem_to_hbm [thread:$0]  %s270_s30, 16, %s709_s5, [#allocation4]  }
 0x162   :  { %460 = dma.done.wait [#allocation4], 16  }
 0x163   :  { %461 = vsyncadd [#allocation4], 4294967280 }
 0x164   :  { %276 = vsyncpa [#allocation3], 1 }
 0x165   :  { %277 = vsyncpa [#allocation6], 1 }
 0x166   :  { %278 = vsyncpa [#allocation9], 1 }
 0x167   :  { %279 = vsyncpa [#allocation4], 1 }

</bundles_post_ra>
